<compile_context>
chip_gen: v7x
topology: tpu7x:2x2x1
jax: 0.10.0
libtpu: 0.0.40
codegen_flags: <defaults>
</compile_context>

<pallas_src>
import jax
import jax.numpy as jnp
from jax.experimental import pallas as pl
from jax.experimental.pallas import tpu as pltpu


# Max lanes per grid step: 3*65536*4 B (x) + 1*65536*4 B (out), double-buffered
# => ~2 MiB of VMEM, safely under the scoped default on v5e/v6e/v7x.
_MAX_LANE_TILE = 65536


def _linear_kernel(x_ref, w_ref, b_ref, o_ref):
    # x_ref: (3, TB) VMEM   w_ref: (3,) SMEM   b_ref: (1,) SMEM   o_ref: (1, TB) VMEM
    # Pure VPU: 3 broadcast multiply-adds + bias. No MXU, no XLU transpose.
    y = (x_ref[0:1, :] * w_ref[0]
         + x_ref[1:2, :] * w_ref[1]
         + x_ref[2:3, :] * w_ref[2]
         + b_ref[0])
    o_ref[...] = y.astype(o_ref.dtype)


def linear_forward(x, weight, bias):
    """y = x @ weight.T + bias  (torch.nn.Linear(3, 1) semantics)

    x:      (B, 3)  float32
    weight: (1, 3)  float32
    bias:   (1,)    float32
    returns (B, 1)  float32
    """
    B, K = x.shape
    O, Kw = weight.shape
    assert K == Kw == 3 and O == 1

    # Lane-dense layout: features on the sublane axis, batch on the lane axis.
    x_t = x.T  # (3, B)

    # Pick a lane tile (multiple of 128); pad B up to a multiple of it.
    if B <= _MAX_LANE_TILE:
        tb = max(128, ((B + 127) // 128) * 128)
    else:
        tb = _MAX_LANE_TILE
    b_pad = pl.cdiv(B, tb) * tb
    if b_pad != B:
        x_t = jnp.pad(x_t, ((0, 0), (0, b_pad - B)))

    w_flat = weight.reshape(K)  # (3,) -> SMEM scalars
    b_flat = bias.reshape(O)    # (1,) -> SMEM scalar

    out = pl.pallas_call(
        _linear_kernel,
        out_shape=jax.ShapeDtypeStruct((O, b_pad), jnp.float32),
        grid_spec=pl.GridSpec(
            grid=(b_pad // tb,),
            in_specs=[
                pl.BlockSpec((K, tb), lambda i: (0, i)),                # x tile (lane-dense)
                pl.BlockSpec(memory_space=pltpu.MemorySpace.SMEM),      # weight (3,)
                pl.BlockSpec(memory_space=pltpu.MemorySpace.SMEM),      # bias   (1,)
            ],
            out_specs=pl.BlockSpec((O, tb), lambda i: (0, i)),          # y tile (lane-dense)
        ),
        compiler_params=pltpu.CompilerParams(
            dimension_semantics=("parallel",),  # megacore sharding of batch on v7x
        ),
    )(x_t, w_flat, b_flat)

    # Drop padding, restore PyTorch (B, 1) layout.
    return out[:, :B].T


if __name__ == "__main__":
    key = jax.random.PRNGKey(0)
    kx, kw, kb = jax.random.split(key, 3)

    batch = 8
    in_features, out_features = 3, 1

    # Deterministic synthetic input and parameters (mimic nn.Linear default init).
    x = jax.random.normal(kx, (batch, in_features), dtype=jnp.float32)
    bound = 1.0 / (in_features ** 0.5)
    weight = jax.random.uniform(
        kw, (out_features, in_features), dtype=jnp.float32, minval=-bound, maxval=bound
    )
    bias = jax.random.uniform(
        kb, (out_features,), dtype=jnp.float32, minval=-bound, maxval=bound
    )

    y = linear_forward(x, weight, bias)
    jax.block_until_ready(y)

    # Reference check in plain JAX.
    y_ref = x @ weight.T + bias
    assert y.shape == (batch, out_features)
    assert jnp.allclose(y, y_ref, atol=1e-5), "mismatch vs reference"

    # NOTE: for tiny batches like this, plain XLA (x @ w.T + b) is faster than any
    # Pallas kernel; the kernel pays off for large B where HBM streaming dominates.
    print("KERNEL_OK")
</pallas_src>

<mosaic_0001>
module attributes {stable_mosaic.version = 11 : i64} {
  func.func @_linear_kernel(%arg0: i32, %arg1: memref<3x128xf32, #tpu.memory_space<vmem>>, %arg2: memref<3xf32, #tpu.memory_space<smem>>, %arg3: memref<1xf32, #tpu.memory_space<smem>>, %arg4: memref<1x128xf32, #tpu.memory_space<vmem>>) attributes {dimension_semantics = [#tpu.dimension_semantics<parallel>], iteration_bounds = array<i64: 1>, scalar_prefetch = 0 : i64, scratch_operands = 0 : i64, tpu.core_type = #tpu.core_type<tc>, window_params = [{transform_indices = @transform_0, window_bounds = array<i64: 3, 128>}, {transform_indices = @transform_1, window_bounds = array<i64: 3>}, {transform_indices = @transform_2, window_bounds = array<i64: 1>}, {transform_indices = @transform_3, window_bounds = array<i64: 1, 128>}]} {
    %c0 = arith.constant 0 : index
    %c0_0 = arith.constant 0 : index
    %0 = vector.load %arg1[%c0, %c0_0] : memref<3x128xf32, #tpu.memory_space<vmem>>, vector<1x128xf32>
    %c0_1 = arith.constant 0 : index
    %1 = memref.load %arg2[%c0_1] : memref<3xf32, #tpu.memory_space<smem>>
    %2 = vector.broadcast %1 : f32 to vector<1x128xf32>
    %3 = arith.mulf %0, %2 : vector<1x128xf32>
    %c1 = arith.constant 1 : index
    %c0_2 = arith.constant 0 : index
    %4 = vector.load %arg1[%c1, %c0_2] : memref<3x128xf32, #tpu.memory_space<vmem>>, vector<1x128xf32>
    %c1_3 = arith.constant 1 : index
    %5 = memref.load %arg2[%c1_3] : memref<3xf32, #tpu.memory_space<smem>>
    %6 = vector.broadcast %5 : f32 to vector<1x128xf32>
    %7 = arith.mulf %4, %6 : vector<1x128xf32>
    %8 = arith.addf %3, %7 : vector<1x128xf32>
    %c2 = arith.constant 2 : index
    %c0_4 = arith.constant 0 : index
    %9 = vector.load %arg1[%c2, %c0_4] : memref<3x128xf32, #tpu.memory_space<vmem>>, vector<1x128xf32>
    %c2_5 = arith.constant 2 : index
    %10 = memref.load %arg2[%c2_5] : memref<3xf32, #tpu.memory_space<smem>>
    %11 = vector.broadcast %10 : f32 to vector<1x128xf32>
    %12 = arith.mulf %9, %11 : vector<1x128xf32>
    %13 = arith.addf %8, %12 : vector<1x128xf32>
    %c0_6 = arith.constant 0 : index
    %14 = memref.load %arg3[%c0_6] : memref<1xf32, #tpu.memory_space<smem>>
    %15 = vector.broadcast %14 : f32 to vector<1x128xf32>
    %16 = arith.addf %13, %15 : vector<1x128xf32>
    %c0_7 = arith.constant 0 : index
    %c0_8 = arith.constant 0 : index
    %17 = vector.load %arg4[%c0_7, %c0_8] : memref<1x128xf32, #tpu.memory_space<vmem>>, vector<1x128xf32>
    tpu.vector_store %arg4[%c0_7, %c0_8], %16 {strides = array<i32>} : memref<1x128xf32, #tpu.memory_space<vmem>>, vector<1x128xf32>,
    return
  }
  func.func @transform_0(%arg0: i32) -> (i32, i32) {
    %c0_i32 = arith.constant 0 : i32
    %c0_i32_0 = arith.constant 0 : i32
    return %c0_i32, %arg0 : i32, i32
  }
  func.func @transform_1(%arg0: i32) -> i32 {
    %c0_i32 = arith.constant 0 : i32
    %c0_i32_0 = arith.constant 0 : i32
    return %c0_i32 : i32
  }
  func.func @transform_2(%arg0: i32) -> i32 {
    %c0_i32 = arith.constant 0 : i32
    %c0_i32_0 = arith.constant 0 : i32
    return %c0_i32 : i32
  }
  func.func @transform_3(%arg0: i32) -> (i32, i32) {
    %c0_i32 = arith.constant 0 : i32
    %c0_i32_0 = arith.constant 0 : i32
    return %c0_i32, %arg0 : i32, i32
  }
}

</mosaic_0001>

<bundles_post_ra>
// kernel: tpu_custom_call.1
= control target key start
LH: loop header
LB: loop body
LE: loop exit
PB: predicated region body
PF: predicated region fallthrough
CT: control target
= control target key end

     0   :  { %9 = vsyncpa [#allocation4], 0  ;;  %s195_s0 = inlined_call_operand.hbm [shape: f32[3,128], index: 0, kind: input, shape index: {}]   ;;  %s196_s1 = inlined_call_operand.vmem [shape: f32[3], index: 1, kind: input, shape index: {}]   ;;  %s197_s2 = inlined_call_operand.<no memory space> [shape: f32[1], index: 2, kind: input, shape index: {}]   ;;  %s198_s3 = inlined_call_operand.hbm [shape: f32[1,128], index: 3, kind: output, shape index: {}]  }
   0x1   :  { %10 = vsyncpa [#allocation6], 0 }
   0x2   :  { %11 = vsyncpa [#allocation5], 0  ;;  %s28_s14 = sshll.u32 %s196_s1, 4  ;;  %s142_s15 = smov [#allocation3]   ;;  %s29_s14 = int_to_ptr.vmem [resolvable:$true] %s28_s14 }
   0x3   :  { %s18_s16 = sshll.u32 %s142_s15, 4  ;;  %s80_s19 = scalar_lea.hbm %s195_s0, 64  ;;  %s19_s16 = int_to_ptr.vmem [resolvable:$true] %s18_s16 }
   0x4   :  { %p81_p0 = scmp.ne.s32.totalorder %s195_s0, %s80_s19  ;;  %p84_p1 = scmp.lt.u32.totalorder %s80_s19, %s195_s0 }
   0x6   :  { %p86_p2 = pnand %p84_p1, %p81_p0 }
   0x8   :  { %89 = shalt.err (!%p86_p2)
}
   0x9   :  { %s90_s24 = scalar_lea.vmem %s19_s16, 64  ;;  %p95_p4 = scmp.lt.s32.totalorder %s19_s16, %s19_s16 }
   0xa   :  { %p91_p3 = scmp.ne.s32.totalorder %s19_s16, %s90_s24  ;;  %p96_p5 = scmp.lt.s32.totalorder %s90_s24, %s90_s24 }
   0xc   :  { %p97_p6 = por %p96_p5, %p95_p4 }
   0xe   :  { %p98_p7 = pnand %p97_p6, %p91_p3 }
  0x10   :  { %101 = shalt.err (!%p98_p7)
}
  0x11   :  { %21 = dma.hbm_to_vmem [thread:$0]  %s195_s0, 64, %s19_s16, [#allocation4]  }
  0x12   :  { %s102_s26 = scalar_lea.vmem %s29_s14, 16  ;;  %p107_p9 = scmp.lt.s32.totalorder %s29_s14, %s29_s14 }
  0x13   :  { %p103_p8 = scmp.ne.s32.totalorder %s29_s14, %s102_s26  ;;  %p108_p10 = scmp.lt.s32.totalorder %s102_s26, %s102_s26 }
  0x15   :  { %p109_p11 = por %p108_p10, %p107_p9 }
  0x17   :  { %p110_p12 = pnand %p109_p11, %p103_p8 }
  0x19   :  { %113 = shalt.err (!%p110_p12)
}
  0x1a   :  { %s143_s27 = smov [#allocation7]  }
  0x1b   :  { %31 = dma.vmem_to_smem %s29_s14, 16, %s143_s27, [#allocation6]  }
  0x1c   :  { %136 = dma.done.wait [#allocation4], 64  }
  0x1d   :  { %137 = vsyncadd [#allocation4], 4294967232 }
  0x1e   :  { %138 = dma.done.wait [#allocation6], 16  }
  0x1f   :  { %139 = vsyncadd [#allocation6], 4294967280 }
  0x20   :  { %40 = sfence }
  0x21   :  { %s42_s28 = sld [smem:[#allocation7]]  ;;  %s75_s29 = sld [smem:[#allocation7 + $0x1]]  ;;  %v41_v0 = vld [vmem:[#allocation3] sm:$0x1]  ;;  %v45_v1 = vld [vmem:[#allocation3 + $0x1] sm:$0x1]  ;;  %v56_v10 = vstv %s197_s2 }
  0x22   :  { %s76_s30 = sld [smem:[#allocation7 + $0x2]]  ;;  %v50_v2 = vld [vmem:[#allocation3 + $0x2] sm:$0x1]  ;;  %s144_s5 = smov [#allocation8]  }
  0x23   :  { %s65_s6 = sshll.u32 %s144_s5, 4  ;;  %s66_s6 = int_to_ptr.vmem [resolvable:$true] %s65_s6 }
  0x24   :  { %s114_s7 = scalar_lea.vmem %s66_s6, 16  ;;  %s118_s8 = scalar_lea.vmem %s66_s6, 32 }
  0x25   :  { %p115_p13 = scmp.ne.s32.totalorder %s66_s6, %s114_s7  ;;  %p119_p0 = scmp.lt.s32.totalorder %s66_s6, %s66_s6 }
  0x26   :  { %p120_p1 = scmp.lt.s32.totalorder %s118_s8, %s114_s7 }
  0x27   :  { %v43_v3 = vstv %s42_s28  ;;  %v47_v5 = vstv %s75_s29 }
  0x28   :  { %v44_v4 = vmul.f32 %v43_v3, %v41_v0  ;;  %v52_v6 = vstv %s76_s30  ;;  %v48_v7 = vmul.f32 %v47_v5, %v45_v1  ;;  %p121_p2 = por %p120_p1, %p119_p0 }
  0x29   :  { %v53_v8 = vmul.f32 %v52_v6, %v50_v2 }
  0x2a   :  { %v49_v9 = vadd.f32 %v48_v7, %v44_v4  ;;  %p122_p3 = pnand %p121_p2, %p115_p13 }
  0x2c   :  { %v54_v11 = vadd.f32 %v53_v8, %v49_v9 }
  0x2e   :  { %v57_v12 = vadd.f32 %v56_v10, %v54_v11 }
  0x30   :  { %58 = vst [vmem:[#allocation8] sm:$0x1] %v57_v12 }
  0x31   :  { %125 = shalt.err (!%p122_p3)
}
  0x32   :  { %s126_s11 = scalar_lea.hbm %s198_s3, 16 }
  0x33   :  { %p127_p4 = scmp.ne.s32.totalorder %s198_s3, %s126_s11  ;;  %p130_p5 = scmp.lt.u32.totalorder %s126_s11, %s198_s3 }
  0x35   :  { %p132_p6 = pnand %p130_p5, %p127_p4 }
  0x37   :  { %135 = shalt.err (!%p132_p6)
}
  0x38   :  { %68 = dma.vmem_to_hbm [thread:$0]  %s66_s6, 16, %s198_s3, [#allocation5]  }
  0x39   :  { %140 = dma.done.wait [#allocation5], 16  }
  0x3a   :  { %141 = vsyncadd [#allocation5], 4294967280 }
  0x3b   :  { %72 = vsyncpa [#allocation4], 1 }
  0x3c   :  { %73 = vsyncpa [#allocation5], 1 }
  0x3d   :  { %74 = vsyncpa [#allocation6], 1 }

</bundles_post_ra>
